<compile_context>
chip_gen: v5e
topology: v5e:2x2
jax: 0.10.0
libtpu: 0.0.40
codegen_flags: <defaults>
</compile_context>

<pallas_src>
import jax
import jax.numpy as jnp
import numpy as np
from jax.experimental import pallas as pl
from jax.experimental.pallas import tpu as pltpu


def _rep_adapter_router_kernel(x_ref, wa_ref, ba_ref, wc_ref, bc_ref, o_ref):
    """One grid step handles one (batch, sequence-tile) block of shape (TN, C)."""
    xb = x_ref[0]                                              # (TN, C) bf16

    # ---- conv_A: 1x1 Conv1d, groups=1  ->  (TN, C) @ (C, H) + bA --------------
    xh = (jnp.dot(xb, wa_ref[...], preferred_element_type=jnp.float32)
          + ba_ref[...]).astype(jnp.bfloat16)                  # (TN, H)
    # TODO(synk): nn.Dropout(0.1) is identity at inference; train-mode dropout omitted.

    # ---- fused conv_B / conv_D with router scaling already folded in ----------
    # out = xh @ Wc[b] + bc[b] + x
    y = jnp.dot(xh, wc_ref[0], preferred_element_type=jnp.float32) + bc_ref[0]
    o_ref[0] = (y + xb.astype(jnp.float32)).astype(o_ref.dtype)


def _pick_seq_tile(n, target=512):
    """Largest sequence tile <= target that evenly divides n (multiple of 8)."""
    if n <= target:
        return n
    for tn in range(target, 7, -1):
        if n % tn == 0 and tn % 8 == 0:
            return tn
    return n


def rep_adapter_router(x, params, *, scale=1.0, t=10.0, seq_tile=512):
    B, N, C = x.shape
    H = params["wa"].shape[1]

    # ---- router hoisted to the wrapper: tiny (B,C)@(C,2) matmul + softmax -----
    logits = (jnp.dot(x[:, 0, :].astype(jnp.float32),
                      params["we"].astype(jnp.float32)) + params["be"]) / t
    rw = jax.nn.softmax(logits, axis=-1) * scale               # (B, 2) f32
    s0 = rw[:, 0][:, None, None]                               # (B, 1, 1)
    s1 = rw[:, 1][:, None, None]

    # ---- fold router scalars into per-batch combined stage-2 weight/bias ------
    wc = (s0 * params["wb"].astype(jnp.float32)
          + s1 * params["wd"].astype(jnp.float32)).astype(jnp.bfloat16)   # (B, H, C)
    bc = (s0 * params["bb"] + s1 * params["bd"]).astype(jnp.float32)      # (B, 1, C)

    TN = _pick_seq_tile(N, seq_tile)
    grid = (B, N // TN)

    # Advisory cost hint so XLA schedules this mem-bound call sensibly.
    itemsize = jnp.dtype(x.dtype).itemsize
    flops = int(2 * B * N * C * H * 2)                 # conv_A + fused conv_BD
    bytes_accessed = int(2 * B * N * C * itemsize      # x in + out
                         + C * H * 2 + B * H * C * 2   # bf16 weights (A + combined BD)
                         + H * 4 + B * C * 4)          # f32 biases

    return pl.pallas_call(
        _rep_adapter_router_kernel,
        out_shape=jax.ShapeDtypeStruct((B, N, C), jnp.bfloat16),
        grid=grid,
        in_specs=[
            pl.BlockSpec((1, TN, C), lambda b, n: (b, n, 0)),   # x tile
            pl.BlockSpec((C, H), lambda b, n: (0, 0)),          # conv_A weight (C, H)
            pl.BlockSpec((1, H), lambda b, n: (0, 0)),          # conv_A bias
            pl.BlockSpec((1, H, C), lambda b, n: (b, 0, 0)),    # combined BD weight
            pl.BlockSpec((1, 1, C), lambda b, n: (b, 0, 0)),    # combined BD bias
        ],
        out_specs=pl.BlockSpec((1, TN, C), lambda b, n: (b, n, 0)),
        compiler_params=pltpu.CompilerParams(
            dimension_semantics=("parallel", "parallel")),
        cost_estimate=pl.CostEstimate(flops=flops, transcendentals=0,
                                      bytes_accessed=bytes_accessed),
    )(x, params["wa"], params["ba"], wc, bc)


def init_params(key, in_features, hidden_dim, groups, dtype=jnp.bfloat16):
    """Deterministic synthetic init.

    Shapes follow the module's __init__ (Conv1d kernel-1 weights squeezed).
    NOTE: the reference zero-inits conv_B/conv_D (identity block); here all
    params get small non-zero values so the kernel path is actually exercised.
    """
    C, H, g = in_features, hidden_dim, groups
    Hg, Cg = H // g, C // g
    ks = jax.random.split(key, 8)
    conv_a_w = jax.random.normal(ks[0], (H, C)) * 0.05      # (out, in) from (H, C, 1)
    conv_a_b = jax.random.normal(ks[1], (H,)) * 0.05
    conv_b_w = jax.random.normal(ks[2], (C, Hg)) * 0.05     # (out, in/groups) from (C, Hg, 1)
    conv_b_b = jax.random.normal(ks[3], (C,)) * 0.05
    conv_d_w = jax.random.normal(ks[4], (C, Hg)) * 0.05
    conv_d_b = jax.random.normal(ks[5], (C,)) * 0.05
    lin_w = jax.random.normal(ks[6], (2, C)) * 0.05         # Linear(in_features, 2)
    lin_b = jax.random.normal(ks[7], (2,)) * 0.05

    def block_diag(conv_w):
        # grouped 1x1 conv (out=C, in=H/g) -> dense (H, C) block-diagonal matrix
        W = np.zeros((H, C), dtype=np.float32)
        w = np.asarray(conv_w, dtype=np.float32)
        for j in range(g):
            W[j * Hg:(j + 1) * Hg, j * Cg:(j + 1) * Cg] = w[j * Cg:(j + 1) * Cg, :].T
        return jnp.asarray(W)

    return {
        "wa": jnp.asarray(conv_a_w).T.astype(dtype),            # (C, H)
        "ba": conv_a_b.reshape(1, H).astype(jnp.float32),
        "wb": block_diag(conv_b_w).astype(dtype),               # (H, C)
        "bb": conv_b_b.reshape(1, C).astype(jnp.float32),
        "wd": block_diag(conv_d_w).astype(dtype),               # (H, C)
        "bd": conv_d_b.reshape(1, C).astype(jnp.float32),
        "we": jnp.asarray(lin_w).T.astype(jnp.float32),         # (C, 2)
        "be": lin_b.reshape(1, 2).astype(jnp.float32),
    }


def reference(x, params, *, scale=1.0, t=10.0):
    """Pure-JAX reference mirroring the module's forward (unfused)."""
    xf = x.astype(jnp.float32)                                   # (B, N, C)
    logits = (jnp.einsum("bc,ce->be", xf[:, 0, :],
                         params["we"].astype(jnp.float32))
              + params["be"]) / t
    w = jax.nn.softmax(logits, axis=-1)                          # (B, 2)
    xb = x.astype(jnp.bfloat16)
    xh = (jnp.einsum("bnc,ch->bnh", xb, params["wa"],
                     preferred_element_type=jnp.float32)
          + params["ba"]).astype(jnp.bfloat16)
    yB = jnp.einsum("bnh,hc->bnc", xh, params["wb"],
                    preferred_element_type=jnp.float32) + params["bb"]
    yD = jnp.einsum("bnh,hc->bnc", xh, params["wd"],
                    preferred_element_type=jnp.float32) + params["bd"]
    out = (yB * scale * w[:, 0][:, None, None]
           + yD * scale * w[:, 1][:, None, None] + xf)
    return out.astype(jnp.bfloat16)


if __name__ == "__main__":
    B, N, C, H, G = 2, 16, 32, 8, 2
    scale, t = 1.0, 10.0

    key = jax.random.PRNGKey(0)
    kx, kp = jax.random.split(key)
    x = (jax.random.normal(kx, (B, N, C)) * 0.5).astype(jnp.bfloat16)
    params = init_params(kp, in_features=C, hidden_dim=H, groups=G)

    # seq_tile=8 -> grid (B, 2): exercises multi-tile sequence indexing.
    out = rep_adapter_router(x, params, scale=scale, t=t, seq_tile=8)
    out = jax.block_until_ready(out)

    ref = jax.block_until_ready(reference(x, params, scale=scale, t=t))
    np.testing.assert_allclose(np.asarray(out, dtype=np.float32),
                               np.asarray(ref, dtype=np.float32),
                               rtol=2e-2, atol=2e-2)
    print("KERNEL_OK")
</pallas_src>

<mosaic_0001>
module attributes {stable_mosaic.version = 11 : i64} {
  func.func @_rep_adapter_router_kernel(%arg0: i32, %arg1: i32, %arg2: memref<1x8x32xbf16, #tpu.memory_space<vmem>>, %arg3: memref<32x8xbf16, #tpu.memory_space<vmem>>, %arg4: memref<1x8xf32, #tpu.memory_space<vmem>>, %arg5: memref<1x8x32xbf16, #tpu.memory_space<vmem>>, %arg6: memref<1x1x32xf32, #tpu.memory_space<vmem>>, %arg7: memref<1x8x32xbf16, #tpu.memory_space<vmem>>) attributes {dimension_semantics = [#tpu.dimension_semantics<parallel>, #tpu.dimension_semantics<parallel>], iteration_bounds = array<i64: 2, 2>, scalar_prefetch = 0 : i64, scratch_operands = 0 : i64, tpu.core_type = #tpu.core_type<tc>, window_params = [{transform_indices = @transform_0, window_bounds = array<i64: 1, 8, 32>}, {pipeline_mode = #tpu.pipeline_mode<synchronous>, transform_indices = @transform_1, window_bounds = array<i64: 32, 8>}, {pipeline_mode = #tpu.pipeline_mode<synchronous>, transform_indices = @transform_2, window_bounds = array<i64: 1, 8>}, {transform_indices = @transform_3, window_bounds = array<i64: 1, 8, 32>}, {transform_indices = @transform_4, window_bounds = array<i64: 1, 1, 32>}, {transform_indices = @transform_5, window_bounds = array<i64: 1, 8, 32>}]} {
    %c0 = arith.constant 0 : index
    %c0_0 = arith.constant 0 : index
    %c0_1 = arith.constant 0 : index
    %0 = vector.load %arg2[%c0, %c0_0, %c0_1] : memref<1x8x32xbf16, #tpu.memory_space<vmem>>, vector<1x8x32xbf16>
    %1 = vector.shape_cast %0 : vector<1x8x32xbf16> to vector<8x32xbf16>
    %c0_2 = arith.constant 0 : index
    %c0_3 = arith.constant 0 : index
    %2 = vector.load %arg3[%c0_2, %c0_3] : memref<32x8xbf16, #tpu.memory_space<vmem>>, vector<32x8xbf16>
    %cst = arith.constant dense<0.000000e+00> : vector<8x8xf32>
    %3 = tpu.matmul %1, %2, %cst {dimension_numbers = #tpu.dot_dimension_numbers<[1], [0], [0], [1], [0, 0, 1, 1], [], []>} : vector<8x32xbf16>, vector<32x8xbf16>, vector<8x8xf32> -> vector<8x8xf32>
    %c0_4 = arith.constant 0 : index
    %c0_5 = arith.constant 0 : index
    %4 = vector.load %arg4[%c0_4, %c0_5] : memref<1x8xf32, #tpu.memory_space<vmem>>, vector<1x8xf32>
    %5 = vector.broadcast %4 : vector<1x8xf32> to vector<8x8xf32>
    %6 = arith.addf %3, %5 : vector<8x8xf32>
    %7 = arith.truncf %6 : vector<8x8xf32> to vector<8x8xbf16>
    %c0_6 = arith.constant 0 : index
    %c0_7 = arith.constant 0 : index
    %c0_8 = arith.constant 0 : index
    %8 = vector.load %arg5[%c0_6, %c0_7, %c0_8] : memref<1x8x32xbf16, #tpu.memory_space<vmem>>, vector<1x8x32xbf16>
    %9 = vector.shape_cast %8 : vector<1x8x32xbf16> to vector<8x32xbf16>
    %cst_9 = arith.constant dense<0.000000e+00> : vector<8x32xf32>
    %10 = tpu.matmul %7, %9, %cst_9 {dimension_numbers = #tpu.dot_dimension_numbers<[1], [0], [0], [1], [0, 0, 1, 1], [], []>} : vector<8x8xbf16>, vector<8x32xbf16>, vector<8x32xf32> -> vector<8x32xf32>
    %c0_10 = arith.constant 0 : index
    %c0_11 = arith.constant 0 : index
    %c0_12 = arith.constant 0 : index
    %11 = vector.load %arg6[%c0_10, %c0_11, %c0_12] : memref<1x1x32xf32, #tpu.memory_space<vmem>>, vector<1x1x32xf32>
    %12 = vector.shape_cast %11 : vector<1x1x32xf32> to vector<1x32xf32>
    %13 = vector.broadcast %12 : vector<1x32xf32> to vector<8x32xf32>
    %14 = arith.addf %10, %13 : vector<8x32xf32>
    %15 = arith.extf %1 : vector<8x32xbf16> to vector<8x32xf32>
    %16 = arith.addf %14, %15 : vector<8x32xf32>
    %17 = arith.truncf %16 : vector<8x32xf32> to vector<8x32xbf16>
    %c0_13 = arith.constant 0 : index
    %c0_14 = arith.constant 0 : index
    %c0_15 = arith.constant 0 : index
    %18 = vector.load %arg7[%c0_13, %c0_14, %c0_15] : memref<1x8x32xbf16, #tpu.memory_space<vmem>>, vector<1x8x32xbf16>
    %19 = vector.shape_cast %18 : vector<1x8x32xbf16> to vector<8x32xbf16>
    %20 = vector.shape_cast %17 : vector<8x32xbf16> to vector<1x8x32xbf16>
    tpu.vector_store %arg7[%c0_13, %c0_14, %c0_15], %20 {strides = array<i32>} : memref<1x8x32xbf16, #tpu.memory_space<vmem>>, vector<1x8x32xbf16>,
    return
  }
  func.func @transform_0(%arg0: i32, %arg1: i32) -> (i32, i32, i32) {
    %c0_i32 = arith.constant 0 : i32
    %c0_i32_0 = arith.constant 0 : i32
    return %arg0, %arg1, %c0_i32 : i32, i32, i32
  }
  func.func @transform_1(%arg0: i32, %arg1: i32) -> (i32, i32) {
    %c0_i32 = arith.constant 0 : i32
    %c0_i32_0 = arith.constant 0 : i32
    %c0_i32_1 = arith.constant 0 : i32
    return %c0_i32, %c0_i32_0 : i32, i32
  }
  func.func @transform_2(%arg0: i32, %arg1: i32) -> (i32, i32) {
    %c0_i32 = arith.constant 0 : i32
    %c0_i32_0 = arith.constant 0 : i32
    %c0_i32_1 = arith.constant 0 : i32
    return %c0_i32, %c0_i32_0 : i32, i32
  }
  func.func @transform_3(%arg0: i32, %arg1: i32) -> (i32, i32, i32) {
    %c0_i32 = arith.constant 0 : i32
    %c0_i32_0 = arith.constant 0 : i32
    %c0_i32_1 = arith.constant 0 : i32
    return %arg0, %c0_i32, %c0_i32_0 : i32, i32, i32
  }
  func.func @transform_4(%arg0: i32, %arg1: i32) -> (i32, i32, i32) {
    %c0_i32 = arith.constant 0 : i32
    %c0_i32_0 = arith.constant 0 : i32
    %c0_i32_1 = arith.constant 0 : i32
    return %arg0, %c0_i32, %c0_i32_0 : i32, i32, i32
  }
  func.func @transform_5(%arg0: i32, %arg1: i32) -> (i32, i32, i32) {
    %c0_i32 = arith.constant 0 : i32
    %c0_i32_0 = arith.constant 0 : i32
    return %arg0, %arg1, %c0_i32 : i32, i32, i32
  }
}

</mosaic_0001>

<bundles_post_ra>
// kernel: tpu_custom_call.1
= control target key start
LH: loop header
LB: loop body
LE: loop exit
PB: predicated region body
PF: predicated region fallthrough
CT: control target
= control target key end

     0   :  { %10 = vsyncpa [#allocation3], 0  ;;  %s1005_s0 = inlined_call_operand.vmem [shape: bf16[2,16,32], index: 0, kind: input, shape index: {}]   ;;  %s1006_s1 = inlined_call_operand.vmem [shape: bf16[32,8], index: 1, kind: input, shape index: {}]   ;;  %s1007_s2 = inlined_call_operand.vmem [shape: f32[1,8], index: 2, kind: input, shape index: {}]   ;;  %s1008_s3 = inlined_call_operand.hbm [shape: bf16[2,8,32], index: 3, kind: input, shape index: {}]   ;;  %s1009_s4 = inlined_call_operand.vmem [shape: f32[2,1,32], index: 4, kind: input, shape index: {}]   ;;  %s1010_s5 = inlined_call_operand.hbm [shape: bf16[2,16,32], index: 5, kind: output, shape index: {}]  }
   0x1   :  { %12 = vsyncpa [#allocation3 + $0x1], 0 }
   0x2   :  { %13 = vsyncpa [#allocation4], 0 }
   0x3   :  { %15 = vsyncpa [#allocation4 + $0x1], 0  ;;  %s816_s18 = smov 0   ;;  %s818_s19 = smov 0  }
   0x4   :  { %s820_s20 = smov 0   ;;  %s822_s21 = smov 0  }
   0x5   :  { %s824_s22 = smov 0   ;;  %s826_s23 = smov 0  }
   0x6   :  { %s828_s24 = smov 0   ;;  %s830_s25 = smov 0  }
   0x7   :  { %s832_s26 = smov 0   ;;  %s834_s27 = smov 0  }
   0x8   :  { %s836_s28 = smov 0  }
   0x9 LB: > { %1016 = sst [smem:[#allocation8_spill]] %s764_s23  ;;  %s500_s29 = sadd.s32 4294967295, %s784_s28   ;;  %s784_s28 = sphi %s836_s28, %s21_s28   ;;  %s780_s27 = sphi %s834_s27, %s1031_s27   ;;  %s776_s26 = sphi %s832_s26, %s1030_s26   ;;  %s772_s25 = sphi %s830_s25, %s1029_s25   ;;  %s768_s24 = sphi %s828_s24, %s1028_s24   ;;  %s764_s23 = sphi %s826_s23, %s1027_s23   ;;  %s760_s22 = sphi %s824_s22, %s1036_s22   ;;  %s756_s21 = sphi %s822_s21, %s1035_s21   ;;  %s752_s20 = sphi %s820_s20, %s1034_s20   ;;  %s748_s19 = sphi %s818_s19, %s1033_s19   ;;  %s744_s18 = sphi %s816_s18, %s1032_s18  }
   0xa   : > { %1017 = sst [smem:[#allocation9_spill]] %s776_s26  ;;  %s501_s30 = sadd.s32 4294967294, %s784_s28  }
   0xb   : > { %1018 = sst [smem:[#allocation10_spill]] %s780_s27  ;;  %s30_s6 = sadd.s32 1, %s776_s26 }
   0xc   : > { %s33_s7 = sadd.s32 1, %s780_s27  ;;  %p31_p0 = scmp.ge.s32.totalorder %s30_s6, 2 }
   0xd   : > { %s110_s8 = sadd.s32 1, %s764_s23  ;;  %p117_p1 = scmp.ne.s32.totalorder %s764_s23, %s760_s22 }
   0xe   : > { %p118_p2 = scmp.eq.s32.totalorder %s784_s28, 0  ;;  %s1038_s6 = smov (%p31_p0, %s30_s6), 0 }
   0xf   : > { %1019 = sst [smem:[#allocation11_spill]] %s1038_s6  ;;  %s1040_s7 = smov (!%p31_p0, %s33_s7), %s780_s27 }
  0x10   : > { %p880_p3 = por %p118_p2, %p117_p1  ;;  %p123_p4 = scmp.ne.s32.totalorder %s760_s22, %s756_s21 }
  0x11   : > { %p35_p5 = scmp.ge.s32.totalorder %s1040_s7, 2  ;;  %p124_p6 = scmp.eq.s32.totalorder %s500_s29, 0 }
  0x12   : > { %s160_s10 = ssub.s32 %s776_s26, %s1038_s6  ;;  %s164_s11 = sadd.s32 1, %s752_s20 }
  0x13   : > { %s1042_s7 = smov (%p35_p5, %s1040_s7), 0  ;;  %p890_p7 = por %p124_p6, %p123_p4 }
  0x14   : > { %1021 = sst [smem:[#allocation12_spill]] %s1042_s7  ;;  %p174_p8 = scmp.ne.s32.totalorder %s752_s20, %s748_s19 }
  0x15   : > { %s107_s13 = ssub.s32 %s780_s27, %s1042_s7  ;;  %p175_p9 = scmp.eq.s32.totalorder %s500_s29, 3 }
  0x16   : > { %p108_p10 = scmp.eq.s32.totalorder %s107_s13, 0  ;;  %s161_s14 = sor.u32 %s160_s10, %s107_s13 }
  0x17   : > { %p162_p11 = scmp.eq.s32.totalorder %s161_s14, 0  ;;  %p898_p12 = por %p175_p9, %p174_p8 }
  0x18   : > { %s903_s16 = scalar_select %p108_p10, %s764_s23, %s110_s8  }
  0x19   : > { %s906_s17 = scalar_select %p162_p11, %s752_s20, %s164_s11  }
  0x1a   : > { %1024 = sst [smem:[#allocation13_spill]] %s903_s16  ;;  %p180_p13 = scmp.ne.s32.totalorder %s748_s19, %s744_s18 }
  0x1b   : > { %p181_p0 = scmp.eq.s32.totalorder %s501_s30, 3  ;;  %p540_p1 = scmp.lt.s32.totalorder %s784_s28, 4 }
  0x1c   : > { %s218_s29 = sand.u32 1, %s764_s23   ;;  %s505_s13 = sshll.u32 %s780_s27, 2 }
  0x1d   : > { %p911_p2 = por %p181_p0, %p180_p13  ;;  %s504_s10 = sshll.u32 %s218_s29, 2 }
  0x1e   : > { %s226_s6 = scalar_lea.hbm %s1008_s3, %s505_s13  ;;  %s222_s8 = scalar_lea.vmem [#allocation2], %s504_s10 }
  0x1f   : > { %s230_s26 = sshll.u32 %s222_s8, 4  ;;  %s228_s16 = sshll.u32 %s226_s6, 4  ;;  %s231_s26 = int_to_ptr.vmem [resolvable:$true] %s230_s26  ;;  %s229_s16 = int_to_ptr.hbm [resolvable:$true] %s228_s16 }
  0x20   : > { %p533_p4 = pnand %p540_p1, %p880_p3  ;;  %p506_p5 = scmp.ge.s32.totalorder %s784_s28, 1 }
  0x21   : > { %p241_p6 = scmp.lt.s32.totalorder %s784_s28, 5  ;;  %s219_s30 = scalar_lea.sflag [#allocation3], %s218_s29 }
  0x22   : > { %535 = dma.hbm_to_vmem [thread:$0]  (!%p533_p4), %s229_s16, 64, %s231_s26, %s219_s30  }
  0x23   : > { %p242_p8 = pnand %p506_p5, %p241_p6 }
  0x24   : > { %s247_s11 = sand.u32 (!%p242_p8), 1, %s760_s22  }
  0x25   : > { %245 = sbr.rel (%p242_p8) target bundleno = 318 (0x13e), region = 40  ;;  %s507_s27 = sshll.u32 (!%p242_p8), %s247_s11, 2 }
  0x26   : > { %s248_s23 = scalar_lea.sflag (!%p242_p8), [#allocation3], %s247_s11  ;;  %s251_s7 = scalar_lea.vmem (!%p242_p8), [#allocation2], %s507_s27 }
  0x2a   : > { %735 = dma.done.wait (%p890_p7), %s248_s23, 64  }
  0x2b   : > { %737 = vsyncadd (%p890_p7), %s248_s23, 4294967232  ;;  %p290_p3 = scmp.lt.s32.totalorder %s772_s25, 1  ;;  %p292_p9 = scmp.lt.s32.totalorder %s768_s24, 1  ;;  %v527_v0 = vld [vmem:[%s1006_s1 + $0x8] sm:$0xff]  ;;  %v526_v1 = vld [vmem:[%s1006_s1] sm:$0xff]  ;;  %vm323_vm0 = vcmask 261120  }
  0x2c   : > { %333 = vmatpush.bf16.msra.mxu0 %v527_v0  ;;  %v341_v3 = vld [vmem:[%s251_s7] sm:$0xf]  ;;  %vm350_vm1 = vcmask 1043456   ;;  %vm346_vm2 = vcmask 64512   ;;  %s522_s29 = sshll.u32 %s772_s25, 1  ;;  %s287_s27 = sand.u32 1, %s748_s19  }
  0x2d   : > { %s932_s26 = scalar_select %p290_p3, %s772_s25, 1  ;;  %v352_v4 = vsel %vm350_vm1, %v341_v3, 0  ;;  %v630_v5 = vld [vmem:[%s1007_s2] ss:$0 sm:$0xff]  ;;  %vm370_vm3 = vcmask 257024  }
  0x2e   : > { %s293_s6 = scalar_select %p292_p9, %s768_s24, 1  ;;  %361 = vmatpush.bf16.msra.mxu1 %v352_v4 }
  0x2f   : > { %s509_s9 = sshll.u32 %s932_s26, 1  ;;  %s508_s23 = sshll.u32 %s287_s27, 2 }
  0x30   : > { %s295_s16 = sadd.s32 %s509_s9, %s293_s6  ;;  %334 = vmatpush.bf16.msra.mxu0 %v526_v1  ;;  %s300_s6 = scalar_lea.vmem %s1009_s4, %s932_s26 }
  0x31   : > { %s510_s10 = sshll.u32 %s295_s16, 2  ;;  %v631_v10 = vld [vmem:[%s300_s6] ss:$0 sm:$0xff]  ;;  %s289_s14 = scalar_lea.vmem [#allocation5], %s508_s23 }
  0x32   : > { %s297_s8 = scalar_lea.vmem %s1005_s0, %s510_s10  ;;  %s383_s10 = sadd.s32 %s768_s24, %s522_s29 }
  0x33   : > { %v302_v2 = vld [vmem:[%s297_s8] sm:$0xf]  ;;  %s523_s12 = sshll.u32 %s383_s10, 2  ;;  %s387_s8 = sshll.u32 %s289_s14, 4  ;;  %s388_s8 = int_to_ptr.vmem [resolvable:$true] %s387_s8 }
  0x34   : > { %519 = vmatmul.msk.bf16.vlgmr.msra.gmra.mxu0 %vm323_vm0, %v302_v2  ;;  %v367_v11 = vunpack.c.l.bf16 %v302_v2  ;;  %s385_s13 = scalar_lea.hbm %s1010_s5, %s523_s12  ;;  %s373_s24 = scalar_lea.sflag [#allocation4], %s287_s27 }
  0x35   : > { %s389_s30 = sshll.u32 %s385_s13, 4  ;;  %s682_s16 = scalar_lea.hbm %s1010_s5, 16  ;;  %s390_s30 = int_to_ptr.hbm [resolvable:$true] %s389_s30 }
  0x36   : > { %s676_s25 = sshra.s32 %s390_s30, 4  ;;  %s677_s25 = int_to_ptr.hbm [resolvable:$true] %s676_s25 }
  0x37   : > { %s678_s11 = scalar_lea.hbm %s677_s25, 4  ;;  %p683_p13 = scmp.lt.s32.totalorder %s677_s25, %s1010_s5 }
  0x38   : > { %p679_p7 = scmp.ne.s32.totalorder %s677_s25, %s678_s11  ;;  %p684_p0 = scmp.lt.s32.totalorder %s682_s16, %s678_s11 }
  0x3a   : > { %p680_p10 = pnand %p679_p7, %p898_p12  ;;  %p685_p1 = por %p684_p0, %p683_p13 }
  0x3c   : > { %p681_p11 = pneg %p680_p10 }
  0x3e   : > { %p686_p4 = pnand %p685_p1, %p681_p11 }
  0xb1   : > { %v336_v6 = vpop.f32.mrf.mxu0 }
  0xb2   : > { %v337_v7 = vadd.f32 %v630_v5, %v336_v6 }
  0xb4   : > { %v340_v8 = vpack.c.bf16 %v337_v7, %v337_v7 }
  0xb6   : > { %520 = vmatmul.msk.bf16.vlgmr.msra.gmra.mxu1 %vm346_vm2, %v340_v8 }
  0xb9   : > { %v338_v9 = vpop.f32.mrf.mxu0 }
 0x133   : > { %v363_v12 = vpop.f32.mrf.mxu1 }
 0x134   : > { %v364_v13 = vadd.f32 %v631_v10, %v363_v12 }
 0x136   : > { %v368_v14 = vadd.f32 %v367_v11, %v364_v13 }
 0x138   : > { %v369_v15 = vpack.c.bf16 %v368_v14, %v368_v14 }
 0x13a   : > { %371 = vst.msk [vmem:[%s289_s14] sm:$0xf] %vm370_vm3, %v369_v15 }
 0x13b   : > { %v365_v16 = vpop.f32.mrf.mxu1 }
 0x13c   : > { %689 = shalt.err (!%p686_p4)
}
 0x13d   : > { %530 = dma.vmem_to_hbm [thread:$0]  (%p898_p12), %s388_s8, 64, %s390_s30, %s373_s24  }
 0x13e PF: > { %p541_p5 = scmp.ge.s32.totalorder %s784_s28, 2  ;;  %s401_s27 = sand.u32 1, %s744_s18  }
 0x13f   : > { %s402_s23 = scalar_lea.sflag [#allocation4], %s401_s27 }
 0x140   : > { %p537_p6 = pnand %p541_p5, %p911_p2 }
 0x142   : > { %p538_p8 = pneg %p537_p6 }
 0x144   : > { %739 = dma.done.wait (%p538_p8), %s402_s23, 64  }
 0x145   : > { %741 = vsyncadd (%p538_p8), %s402_s23, 4294967232  ;;  %s21_s28 = sadd.s32 1, %s784_s28   ;;  %s1026_s15 = sld [smem:[#allocation8_spill]] }
 0x146   : > { %p18_p3 = scmp.ge.s32.totalorder %s21_s28, 6   ;;  %s1027_s23 = sld [smem:[#allocation13_spill]] }
 0x147   : > { %s1028_s24 = sld [smem:[#allocation9_spill]]  ;;  %s1032_s18 = smov %s748_s19 }
 0x148   : > { %s1029_s25 = sld [smem:[#allocation10_spill]]  ;;  %s1033_s19 = smov %s752_s20 }
 0x149   : > { %s1030_s26 = sld [smem:[#allocation11_spill]]  ;;  %s1034_s20 = smov %s906_s17 }
 0x14a   : > { %s1031_s27 = sld [smem:[#allocation12_spill]]  ;;  %s1035_s21 = smov %s760_s22 }
 0x14b   : > { %s1036_s22 = smov %s1026_s15  ;;  %20 = sbr.rel (!%p18_p3) target bundleno = 9 (0x9), region = 91 }
 0x150   :  { %408 = vsyncpa [#allocation3], 1 }
 0x151   :  { %410 = vsyncpa [#allocation3 + $0x1], 1 }
 0x152   :  { %411 = vsyncpa [#allocation4], 1 }
 0x153   :  { %413 = vsyncpa [#allocation4 + $0x1], 1 }

</bundles_post_ra>
